<compile_context>
chip_gen: v6e
topology: v6e:2x2x1
jax: 0.10.0
libtpu: 0.0.40
codegen_flags: <defaults>
</compile_context>

<pallas_src>
import jax
import jax.numpy as jnp
from jax.experimental import pallas as pl
from jax.experimental.pallas import tpu as pltpu

LEAKY_SLOPE = 0.01  # PyTorch nn.LeakyReLU default


def _leaky_relu(h):
    return jnp.where(h > 0, h, LEAKY_SLOPE * h)


def weg_kernel(x_ref, w_ref, b_ref, o_ref):
    # x_ref : (1, C, block_hw) VMEM tile (channel-major pixels)
    # w_ref : (3, C, C) VMEM, PyTorch (out_c, in_c) layout, resident
    # b_ref : (3, C, 1) VMEM, resident
    # o_ref : (1, C, block_hw) VMEM tile
    h = x_ref[0]                                                   # (C, block_hw)
    h = jnp.dot(w_ref[0], h, preferred_element_type=jnp.float32) + b_ref[0]
    h = _leaky_relu(h)
    h = jnp.dot(w_ref[1], h, preferred_element_type=jnp.float32) + b_ref[1]
    h = _leaky_relu(h)
    h = jnp.dot(w_ref[2], h, preferred_element_type=jnp.float32) + b_ref[2]
    o_ref[0] = jax.nn.sigmoid(h).astype(o_ref.dtype)


def _vmem_capacity_bytes():
    try:
        return int(pltpu.get_tpu_info().vmem_capacity_bytes)
    except Exception:
        return 128 * 1024 * 1024  # v5e/v6e physical VMEM


def _is_dual_tensorcore():
    try:
        return "v7" in jax.devices()[0].device_kind.lower()
    except Exception:
        return False


def weight_related_forward(x, w_packed, b_packed):
    """Fused forward of the three 1x1 convs + activations.

    x        : (N, C, H, W) float32
    w_packed : (3, C, C)  conv weights in PyTorch (out_c, in_c) layout
    b_packed : (3, C, 1)  conv biases
    """
    N, C, H, W = x.shape
    HW = H * W
    itemsize = jnp.dtype(x.dtype).itemsize

    # Free view: NCHW -> (N, C, H*W). No transpose, no copy.
    x3 = x.reshape(N, C, HW)

    # --- tile sizing from a per-generation VMEM budget -----------------------
    vmem_cap = _vmem_capacity_bytes()
    budget = vmem_cap // 2                     # headroom for weights & misc
    # Per grid step: input tile + output tile, each double-buffered -> 4 bufs.
    max_block_hw = max(128, budget // (4 * C * itemsize))

    if HW < 128:
        block_hw = HW                          # full-dim (exact) block
    else:
        block_hw = min(max_block_hw, HW)
        block_hw = max(128, (block_hw // 128) * 128)

    # v7x has two TensorCores: make sure the "parallel" grid has >= 2 steps.
    if _is_dual_tensorcore() and N * pl.cdiv(HW, block_hw) < 2 and block_hw >= 256:
        block_hw = max(128, ((block_hw // 2) // 128) * 128)

    grid = (N, pl.cdiv(HW, block_hw))

    act_tile_bytes = C * block_hw * itemsize
    weight_bytes = (w_packed.size * jnp.dtype(w_packed.dtype).itemsize
                    + b_packed.size * jnp.dtype(b_packed.dtype).itemsize)
    vmem_limit = int(min(vmem_cap * 3 // 4,
                         max(4 * act_tile_bytes + weight_bytes + (4 << 20),
                             32 << 20)))

    const3 = lambda n, j: (0, 0, 0)

    out3 = pl.pallas_call(
        weg_kernel,
        out_shape=jax.ShapeDtypeStruct((N, C, HW), x.dtype),
        grid_spec=pltpu.PrefetchScalarGridSpec(
            num_scalar_prefetch=0,
            grid=grid,
            in_specs=[
                pl.BlockSpec((1, C, block_hw), lambda n, j: (n, 0, j)),  # x tile
                pl.BlockSpec((3, C, C), const3),                         # weights
                pl.BlockSpec((3, C, 1), const3),                         # biases
            ],
            out_specs=pl.BlockSpec((1, C, block_hw), lambda n, j: (n, 0, j)),
        ),
        compiler_params=pltpu.CompilerParams(
            dimension_semantics=("parallel", "parallel"),
            vmem_limit_bytes=vmem_limit,
        ),
    )(x3, w_packed, b_packed)

    return out3.reshape(N, C, H, W)  # free view back to NCHW


def _reference_forward(x, w1, b1, w2, b2, w3, b3):
    """Plain-JAX reference using PyTorch conv layout (out_c, in_c, 1, 1)."""
    def conv1x1(h, w, b):
        O, Ci = w.shape[0], w.shape[1]
        return (jnp.einsum("nchw,oc->nohw", h, w.reshape(O, Ci))
                + b[None, :, None, None])

    h = _leaky_relu(conv1x1(x, w1, b1))
    h = _leaky_relu(conv1x1(h, w2, b2))
    return jax.nn.sigmoid(conv1x1(h, w3, b3))


if __name__ == "__main__":
    key = jax.random.PRNGKey(0)
    keys = jax.random.split(key, 7)

    # Small input consistent with the module: batch=2, channels=32, 16x16 spatial.
    N, C, H, W = 2, 32, 16, 16
    x = jax.random.normal(keys[0], (N, C, H, W), dtype=jnp.float32)

    # Deterministic parameter init (mimic nn.Conv2d default uniform bound 1/sqrt(fan_in)).
    bound = 1.0 / (C ** 0.5)

    def init_conv(kw, kb):
        w = jax.random.uniform(kw, (C, C, 1, 1), minval=-bound, maxval=bound,
                               dtype=jnp.float32)
        b = jax.random.uniform(kb, (C,), minval=-bound, maxval=bound,
                               dtype=jnp.float32)
        return w, b

    w1, b1 = init_conv(keys[1], keys[2])
    w2, b2 = init_conv(keys[3], keys[4])
    w3, b3 = init_conv(keys[5], keys[6])

    # Pack parameters once (outside the per-call path): (3, C, C) weights in
    # PyTorch (out_c, in_c) layout and (3, C, 1) biases.
    w_packed = jnp.stack([w.reshape(C, C) for w in (w1, w2, w3)])
    b_packed = jnp.stack([b.reshape(C, 1) for b in (b1, b2, b3)])

    y = weight_related_forward(x, w_packed, b_packed)
    y = jax.block_until_ready(y)

    y_ref = _reference_forward(x, w1, b1, w2, b2, w3, b3)
    assert y.shape == (N, C, H, W)
    assert jnp.allclose(y, y_ref, atol=1e-4, rtol=1e-4)

    print("KERNEL_OK")
</pallas_src>

<mosaic_0001>
module attributes {stable_mosaic.version = 11 : i64} {
  func.func @weg_kernel(%arg0: i32, %arg1: i32, %arg2: memref<1x32x256xf32, #tpu.memory_space<vmem>>, %arg3: memref<3x32x32xf32, #tpu.memory_space<vmem>>, %arg4: memref<3x32x1xf32, #tpu.memory_space<vmem>>, %arg5: memref<1x32x256xf32, #tpu.memory_space<vmem>>) attributes {dimension_semantics = [#tpu.dimension_semantics<parallel>, #tpu.dimension_semantics<parallel>], iteration_bounds = array<i64: 2, 1>, scalar_prefetch = 0 : i64, scratch_operands = 0 : i64, tpu.core_type = #tpu.core_type<tc>, window_params = [{transform_indices = @transform_0, window_bounds = array<i64: 1, 32, 256>}, {pipeline_mode = #tpu.pipeline_mode<synchronous>, transform_indices = @transform_1, window_bounds = array<i64: 3, 32, 32>}, {pipeline_mode = #tpu.pipeline_mode<synchronous>, transform_indices = @transform_2, window_bounds = array<i64: 3, 32, 1>}, {transform_indices = @transform_3, window_bounds = array<i64: 1, 32, 256>}]} {
    %c0 = arith.constant 0 : index
    %c0_0 = arith.constant 0 : index
    %c0_1 = arith.constant 0 : index
    %0 = vector.load %arg2[%c0, %c0_0, %c0_1] : memref<1x32x256xf32, #tpu.memory_space<vmem>>, vector<1x32x256xf32>
    %1 = vector.shape_cast %0 : vector<1x32x256xf32> to vector<32x256xf32>
    %c0_2 = arith.constant 0 : index
    %c0_3 = arith.constant 0 : index
    %c0_4 = arith.constant 0 : index
    %2 = vector.load %arg3[%c0_2, %c0_3, %c0_4] : memref<3x32x32xf32, #tpu.memory_space<vmem>>, vector<1x32x32xf32>
    %3 = vector.shape_cast %2 : vector<1x32x32xf32> to vector<32x32xf32>
    %cst = arith.constant dense<0.000000e+00> : vector<32x256xf32>
    %4 = tpu.matmul %3, %1, %cst {dimension_numbers = #tpu.dot_dimension_numbers<[1], [0], [0], [1], [0, 0, 1, 1], [], []>} : vector<32x32xf32>, vector<32x256xf32>, vector<32x256xf32> -> vector<32x256xf32>
    %c0_5 = arith.constant 0 : index
    %c0_6 = arith.constant 0 : index
    %c0_7 = arith.constant 0 : index
    %5 = vector.load %arg4[%c0_5, %c0_6, %c0_7] : memref<3x32x1xf32, #tpu.memory_space<vmem>>, vector<1x32x1xf32>
    %6 = vector.shape_cast %5 : vector<1x32x1xf32> to vector<32x1xf32>
    %7 = vector.broadcast %6 : vector<32x1xf32> to vector<32x256xf32>
    %8 = arith.addf %4, %7 : vector<32x256xf32>
    %cst_8 = arith.constant 0.000000e+00 : f32
    %9 = vector.broadcast %cst_8 : f32 to vector<32x256xf32>
    %10 = arith.cmpf ogt, %8, %9 : vector<32x256xf32>
    %cst_9 = arith.constant 0.00999999977 : f32
    %11 = vector.broadcast %cst_9 : f32 to vector<32x256xf32>
    %12 = arith.mulf %11, %8 : vector<32x256xf32>
    %13 = arith.select %10, %8, %12 : vector<32x256xi1>, vector<32x256xf32>
    %c1 = arith.constant 1 : index
    %c0_10 = arith.constant 0 : index
    %c0_11 = arith.constant 0 : index
    %14 = vector.load %arg3[%c1, %c0_10, %c0_11] : memref<3x32x32xf32, #tpu.memory_space<vmem>>, vector<1x32x32xf32>
    %15 = vector.shape_cast %14 : vector<1x32x32xf32> to vector<32x32xf32>
    %cst_12 = arith.constant dense<0.000000e+00> : vector<32x256xf32>
    %16 = tpu.matmul %15, %13, %cst_12 {dimension_numbers = #tpu.dot_dimension_numbers<[1], [0], [0], [1], [0, 0, 1, 1], [], []>} : vector<32x32xf32>, vector<32x256xf32>, vector<32x256xf32> -> vector<32x256xf32>
    %c1_13 = arith.constant 1 : index
    %c0_14 = arith.constant 0 : index
    %c0_15 = arith.constant 0 : index
    %17 = vector.load %arg4[%c1_13, %c0_14, %c0_15] : memref<3x32x1xf32, #tpu.memory_space<vmem>>, vector<1x32x1xf32>
    %18 = vector.shape_cast %17 : vector<1x32x1xf32> to vector<32x1xf32>
    %19 = vector.broadcast %18 : vector<32x1xf32> to vector<32x256xf32>
    %20 = arith.addf %16, %19 : vector<32x256xf32>
    %cst_16 = arith.constant 0.000000e+00 : f32
    %21 = vector.broadcast %cst_16 : f32 to vector<32x256xf32>
    %22 = arith.cmpf ogt, %20, %21 : vector<32x256xf32>
    %cst_17 = arith.constant 0.00999999977 : f32
    %23 = vector.broadcast %cst_17 : f32 to vector<32x256xf32>
    %24 = arith.mulf %23, %20 : vector<32x256xf32>
    %25 = arith.select %22, %20, %24 : vector<32x256xi1>, vector<32x256xf32>
    %c2 = arith.constant 2 : index
    %c0_18 = arith.constant 0 : index
    %c0_19 = arith.constant 0 : index
    %26 = vector.load %arg3[%c2, %c0_18, %c0_19] : memref<3x32x32xf32, #tpu.memory_space<vmem>>, vector<1x32x32xf32>
    %27 = vector.shape_cast %26 : vector<1x32x32xf32> to vector<32x32xf32>
    %cst_20 = arith.constant dense<0.000000e+00> : vector<32x256xf32>
    %28 = tpu.matmul %27, %25, %cst_20 {dimension_numbers = #tpu.dot_dimension_numbers<[1], [0], [0], [1], [0, 0, 1, 1], [], []>} : vector<32x32xf32>, vector<32x256xf32>, vector<32x256xf32> -> vector<32x256xf32>
    %c2_21 = arith.constant 2 : index
    %c0_22 = arith.constant 0 : index
    %c0_23 = arith.constant 0 : index
    %29 = vector.load %arg4[%c2_21, %c0_22, %c0_23] : memref<3x32x1xf32, #tpu.memory_space<vmem>>, vector<1x32x1xf32>
    %30 = vector.shape_cast %29 : vector<1x32x1xf32> to vector<32x1xf32>
    %31 = vector.broadcast %30 : vector<32x1xf32> to vector<32x256xf32>
    %32 = arith.addf %28, %31 : vector<32x256xf32>
    %33 = arith.negf %32 : vector<32x256xf32>
    %34 = math.exp %33 : vector<32x256xf32>
    %cst_24 = arith.constant 1.000000e+00 : f32
    %35 = vector.broadcast %cst_24 : f32 to vector<32x256xf32>
    %36 = arith.addf %35, %34 : vector<32x256xf32>
    %37 = arith.divf %35, %36 : vector<32x256xf32>
    %c0_25 = arith.constant 0 : index
    %c0_26 = arith.constant 0 : index
    %c0_27 = arith.constant 0 : index
    %38 = vector.load %arg5[%c0_25, %c0_26, %c0_27] : memref<1x32x256xf32, #tpu.memory_space<vmem>>, vector<1x32x256xf32>
    %39 = vector.shape_cast %38 : vector<1x32x256xf32> to vector<32x256xf32>
    %40 = vector.shape_cast %37 : vector<32x256xf32> to vector<1x32x256xf32>
    tpu.vector_store %arg5[%c0_25, %c0_26, %c0_27], %40 {strides = array<i32>} : memref<1x32x256xf32, #tpu.memory_space<vmem>>, vector<1x32x256xf32>,
    return
  }
  func.func @transform_0(%arg0: i32, %arg1: i32) -> (i32, i32, i32) {
    %c0_i32 = arith.constant 0 : i32
    %c0_i32_0 = arith.constant 0 : i32
    return %arg0, %c0_i32, %arg1 : i32, i32, i32
  }
  func.func @transform_1(%arg0: i32, %arg1: i32) -> (i32, i32, i32) {
    %c0_i32 = arith.constant 0 : i32
    %c0_i32_0 = arith.constant 0 : i32
    %c0_i32_1 = arith.constant 0 : i32
    %c0_i32_2 = arith.constant 0 : i32
    return %c0_i32, %c0_i32_0, %c0_i32_1 : i32, i32, i32
  }
  func.func @transform_2(%arg0: i32, %arg1: i32) -> (i32, i32, i32) {
    %c0_i32 = arith.constant 0 : i32
    %c0_i32_0 = arith.constant 0 : i32
    %c0_i32_1 = arith.constant 0 : i32
    %c0_i32_2 = arith.constant 0 : i32
    return %c0_i32, %c0_i32_0, %c0_i32_1 : i32, i32, i32
  }
  func.func @transform_3(%arg0: i32, %arg1: i32) -> (i32, i32, i32) {
    %c0_i32 = arith.constant 0 : i32
    %c0_i32_0 = arith.constant 0 : i32
    return %arg0, %c0_i32, %arg1 : i32, i32, i32
  }
}

</mosaic_0001>

<bundles_post_ra>
// kernel: tpu_custom_call.1
= control target key start
LH: loop header
LB: loop body
LE: loop exit
PB: predicated region body
PF: predicated region fallthrough
CT: control target
= control target key end

     0   :  { %8 = vsyncpa [#allocation3], 0  ;;  %s1363_s0 = inlined_call_operand.hbm [shape: f32[2,32,256], index: 0, kind: input, shape index: {}]   ;;  %s1364_s1 = inlined_call_operand.vmem [shape: f32[3,32,32], index: 1, kind: input, shape index: {}]   ;;  %s1365_s2 = inlined_call_operand.vmem [shape: f32[3,32,1], index: 2, kind: input, shape index: {}]   ;;  %s1366_s3 = inlined_call_operand.hbm [shape: f32[2,32,256], index: 3, kind: output, shape index: {}]  }
   0x1   :  { %10 = vsyncpa [#allocation3 + $0x1], 0 }
   0x2   :  { %11 = vsyncpa [#allocation4], 0 }
   0x3   :  { %13 = vsyncpa [#allocation4 + $0x1], 0  ;;  %s1117_s12 = smov 0   ;;  %s1119_s13 = smov 0  }
   0x4   :  { %s1121_s14 = smov 0   ;;  %s1123_s15 = smov 0  }
   0x5   :  { %s1125_s16 = smov 0   ;;  %s1127_s17 = smov 0  }
   0x6 LB: > { %s816_s18 = sadd.s32 4294967295, %s1087_s17   ;;  %s817_s19 = sadd.s32 4294967294, %s1087_s17   ;;  %s1087_s17 = sphi %s1127_s17, %s19_s17   ;;  %s1083_s16 = sphi %s1125_s16, %s1377_s16   ;;  %s1079_s15 = sphi %s1123_s15, %s1376_s15   ;;  %s1075_s14 = sphi %s1121_s14, %s1375_s14   ;;  %s1071_s13 = sphi %s1119_s13, %s1374_s13   ;;  %s1067_s12 = sphi %s1117_s12, %s1373_s12  }
   0x7   : > { %s31_s20 = sadd.s32 1, %s1083_s16  ;;  %s40_s21 = sadd.s32 1, %s1075_s14 }
   0x8   : > { %p33_p0 = scmp.ge.s32.totalorder %s31_s20, 2  ;;  %p47_p1 = scmp.ne.s32.totalorder %s1075_s14, %s1071_s13 }
   0x9   : > { %p48_p2 = scmp.eq.s32.totalorder %s1087_s17, 0  ;;  %p53_p3 = scmp.ne.s32.totalorder %s1071_s13, %s1067_s12 }
   0xa   : > { %s1379_s20 = smov (%p33_p0, %s31_s20), 0  ;;  %p54_p5 = scmp.eq.s32.totalorder %s816_s18, 0 }
   0xb   : > { %p1158_p4 = por %p48_p2, %p47_p1  ;;  %s35_s23 = ssub.s32 %s1083_s16, %s1379_s20 }
   0xc   : > { %p121_p6 = scmp.eq.s32.totalorder %s816_s18, 1  ;;  %p38_p7 = scmp.eq.s32.totalorder %s35_s23, 0 }
   0xd   : > { %p1164_p8 = por %p54_p5, %p53_p3  ;;  %p127_p10 = scmp.eq.s32.totalorder %s817_s19, 1 }
   0xe   : > { %p1168_p9 = por %p121_p6, %p47_p1  ;;  %p889_p13 = scmp.lt.s32.totalorder %s1087_s17, 2 }
   0xf   : > { %s1173_s26 = scalar_select %p38_p7, %s1075_s14, %s40_s21  }
  0x10   : > { %p1175_p11 = por %p127_p10, %p53_p3  ;;  %s153_s28 = sand.u32 1, %s1075_s14  }
  0x11   : > { %s820_s29 = sshll.u32 %s153_s28, 6  ;;  %s867_s30 = sshll.u32 %s1083_s16, 10 }
  0x12   : > { %s165_s6 = scalar_lea.hbm %s1363_s0, %s867_s30  ;;  %s157_s7 = scalar_lea.vmem [#allocation2], %s820_s29 }
  0x13   : > { %s166_s8 = sshll.u32 %s157_s7, 4  ;;  %p1188_p0 = pnand %p889_p13, %p1158_p4  ;;  %s167_s8 = int_to_ptr.vmem [resolvable:$true] %s166_s8 }
  0x14   : > { %p823_p1 = scmp.ge.s32.totalorder %s1087_s17, 1  ;;  %s154_s10 = scalar_lea.sflag [#allocation3], %s153_s28 }
  0x15   : > { %p981_p2 = pneg %p1188_p0  ;;  %s992_s11 = scalar_lea.vmem %s167_s8, 1024 }
  0x16   : > { %p993_p3 = scmp.ne.s32.totalorder %s167_s8, %s992_s11  ;;  %s1089_s18 = smov [#allocation2]  }
  0x17   : > { %s997_s19 = sshll.u32 %s1089_s18, 4  ;;  %s998_s19 = int_to_ptr.vmem [resolvable:$false] %s997_s19 }
  0x18   : > { %p995_p5 = pnand %p993_p3, %p981_p2  ;;  %s999_s21 = scalar_lea.vmem %s998_s19, 2048 }
  0x19   : > { %p1000_p7 = scmp.lt.s32.totalorder %s167_s8, %s998_s19  ;;  %p1001_p10 = scmp.lt.s32.totalorder %s999_s21, %s992_s11 }
  0x1a   : > { %p996_p6 = pneg %p995_p5 }
  0x1b   : > { %p1002_p12 = por %p1001_p10, %p1000_p7 }
  0x1d   : > { %p1003_p4 = pnand %p1002_p12, %p996_p6 }
  0x1f   : > { %1006 = shalt.err (!%p1003_p4)
}
  0x20   : > { %s1090_s22 = smov 256   ;;  %s1091_s23 = smov 16  }
  0x21   : > { %884 = dma.hbm_to_vmem [thread:$0]  (!%p1188_p0), %s165_s6, 1024, %s167_s8, %s154_s10, %s1090_s22, %s1090_s22, %s1091_s23  }
  0x22   : > { %p174_p13 = scmp.lt.s32.totalorder %s1087_s17, 3 }
  0x24   : > { %p175_p2 = pnand %p823_p1, %p174_p13 }
  0x25   : > { %s1201_s28 = sand.u32 (!%p175_p2), 1, %s1071_s13  }
  0x26   : > { %178 = sbr.rel (%p175_p2) target bundleno = 742 (0x2e6), region = 32  ;;  %s824_s29 = sshll.u32 (!%p175_p2), %s1201_s28, 6 }
  0x27   : > { %s181_s30 = scalar_lea.sflag (!%p175_p2), [#allocation3], %s1201_s28  ;;  %s184_s4 = scalar_lea.vmem (!%p175_p2), [#allocation2], %s824_s29 }
  0x2b   : > { %1058 = dma.done.wait (%p1164_p8), %s181_s30, 1024  }
  0x2c   : > { %1060 = vsyncadd (%p1164_p8), %s181_s30, 4294966272  ;;  %v1092_v0 = vmov 0.0   ;;  %v1093_v1 = vmov 0   ;;  %v216_v2 = vld [vmem:[%s184_s4 + $0x38] sm:$0xff]  ;;  %v215_v3 = vld [vmem:[%s184_s4 + $0x30] sm:$0xff]  ;;  %vm245_vm0 = vcmask 261120  }
  0x2d   : > { %322 = vmatprep.mubr.f32.mxu0 %v1092_v0  ;;  %334 = vmatprep.mubr.f32.mxu1 %v1092_v0  ;;  %v214_v4 = vld [vmem:[%s184_s4 + $0x28] sm:$0xff]  ;;  %v213_v5 = vld [vmem:[%s184_s4 + $0x20] sm:$0xff]  ;;  %v212_v6 = vld [vmem:[%s184_s4 + $0x18] sm:$0xff]  ;;  %s206_s7 = scalar_lea.vmem [#allocation5], %s824_s29  ;;  %s868_s8 = sshll.u32 %s1079_s15, 10 }
  0x2e   : > { %945 = vset.pattern.permute.xlu0 %v1093_v1  ;;  %946 = vset.pattern.permute.xlu1 %v1093_v1  ;;  %v211_v7 = vld [vmem:[%s184_s4 + $0x10] sm:$0xff]  ;;  %v210_v8 = vld [vmem:[%s184_s4 + $0x8] sm:$0xff]  ;;  %v209_v9 = vld [vmem:[%s184_s4] sm:$0xff]  ;;  %s729_s9 = sshll.u32 %s206_s7, 4  ;;  %s1313_s29 = scalar_lea.hbm %s1366_s3, %s868_s8  ;;  %s1315_s9 = int_to_ptr.vmem [resolvable:$true] %s729_s9 }
  0x2f   : > { %282 = vmatprep.subr.mxu0 %v216_v2  ;;  %869 = vmatprep.subr.mxu1 %v216_v2  ;;  %v217_v10 = vld [vmem:[%s1364_s1] sm:$0xff]  ;;  %v219_v11 = vld [vmem:[%s1364_s1 + $0x10] sm:$0xff]  ;;  %v224_v12 = vld [vmem:[%s1365_s2 + $0x18] sm:$0xff]  ;;  %s714_s18 = scalar_lea.sflag [#allocation4], %s1201_s28  ;;  %s1007_s19 = scalar_lea.vmem %s1315_s9, 1024 }
  0x30   : > { %283 = vmatpush1.msra.mxu0 %v215_v3  ;;  %873 = vmatpush1.msra.mxu1 %v215_v3  ;;  %v222_v13 = vld [vmem:[%s1365_s2 + $0x8] sm:$0xff]  ;;  %v220_v15 = vld [vmem:[%s1364_s1 + $0x18] sm:$0xff]  ;;  %v223_v16 = vld [vmem:[%s1365_s2 + $0x10] sm:$0xff]  ;;  %p1008_p8 = scmp.ne.s32.totalorder %s1315_s9, %s1007_s19  ;;  %s1094_s15 = smov [#allocation5]  }
  0x31   : > { %284 = vmatprep.subr.mxu0 %v214_v4  ;;  %870 = vmatprep.subr.mxu1 %v214_v4  ;;  %v218_v14 = vld [vmem:[%s1364_s1 + $0x8] sm:$0xff]  ;;  %v221_v17 = vld [vmem:[%s1365_s2] sm:$0xff]  ;;  %v837_v18 = vld [vmem:[%s1365_s2 + $0x38] sm:$0xff]  ;;  %s1011_s21 = sshll.u32 %s1094_s15, 4  ;;  %s1012_s21 = int_to_ptr.vmem [resolvable:$false] %s1011_s21 }
  0x32   : > { %285 = vmatpush1.msra.mxu0 %v213_v5  ;;  %874 = vmatpush1.msra.mxu1 %v213_v5  ;;  %v836_v19 = vld [vmem:[%s1365_s2 + $0x30] sm:$0xff]  ;;  %v835_v20 = vld [vmem:[%s1365_s2 + $0x28] sm:$0xff]  ;;  %v834_v21 = vld [vmem:[%s1365_s2 + $0x20] sm:$0xff]  ;;  %p1009_p12 = pnand %p1008_p8, %p1168_p9  ;;  %s1013_s22 = scalar_lea.vmem %s1012_s21, 2048 }
  0x33   : > { %286 = vmatprep.subr.mxu0 %v212_v6  ;;  %871 = vmatprep.subr.mxu1 %v212_v6  ;;  %v846_v22 = vld [vmem:[%s1365_s2 + $0x40] sm:$0xff]  ;;  %v847_v23 = vld [vmem:[%s1365_s2 + $0x48] sm:$0xff]  ;;  %v848_v24 = vld [vmem:[%s1365_s2 + $0x50] sm:$0xff]  ;;  %p1014_p1 = scmp.lt.s32.totalorder %s1315_s9, %s1012_s21  ;;  %p1015_p3 = scmp.lt.s32.totalorder %s1013_s22, %s1007_s19 }
  0x34   : > { %287 = vmatpush1.msra.mxu0 %v211_v7  ;;  %875 = vmatpush1.msra.mxu1 %v211_v7  ;;  %v849_v25 = vld [vmem:[%s1365_s2 + $0x58] sm:$0xff]  ;;  %v830_v61 = vld [vmem:[%s1364_s1 + $0x20] sm:$0xff]  ;;  %v831_v63 = vld [vmem:[%s1364_s1 + $0x28] sm:$0xff]  ;;  %p1010_p0 = pneg %p1009_p12 }
  0x35   : > { %288 = vmatprep.subr.mxu0 %v210_v8  ;;  %872 = vmatprep.subr.mxu1 %v210_v8  ;;  %v832_v1 = vld [vmem:[%s1364_s1 + $0x30] sm:$0xff]  ;;  %v833_v2 = vld [vmem:[%s1364_s1 + $0x38] sm:$0xff]  ;;  %p1016_p5 = por %p1015_p3, %p1014_p1 }
  0x36   : > { %289 = vmatpush1.msra.mxu0 %v209_v9  ;;  %876 = vmatpush1.msra.mxu1 %v209_v9 }
  0x37   : > { %826 = vmatmul.mubr.msk.f32.vlgmr.msra.gmra.mxu0 %vm245_vm0, %v217_v10  ;;  %828 = vmatmul.mubr.msk.f32.vlgmr.msra.gmra.mxu1 %vm245_vm0, %v219_v11  ;;  %p1017_p6 = pnand %p1016_p5, %p1010_p0 }
  0x38   : > { %328 = vmatprep.mubr.f32.mxu0 %v1092_v0  ;;  %340 = vmatprep.mubr.f32.mxu1 %v1092_v0 }
  0x39   : > { %242 = vperm.xlu0 %945, %v224_v12   ;;  %232 = vperm.xlu1 %946, %v222_v13  }
  0x3b   : > { %827 = vmatmul.mubr.msk.f32.gmra.mxu0 %vm245_vm0, %v218_v14  ;;  %829 = vmatmul.mubr.msk.f32.gmra.mxu1 %vm245_vm0, %v220_v15 }
  0x3c   : > { %477 = vmatprep.mubr.f32.mxu1 %v1092_v0  ;;  %632 = vmatprep.mubr.f32.mxu0 %v1092_v0 }
  0x3d   : > { %237 = vperm.xlu0 %945, %v223_v16   ;;  %227 = vperm.xlu1 %946, %v221_v17  }
  0x41   : > { %398 = vperm.xlu0 %945, %v837_v18   ;;  %393 = vperm.xlu1 %946, %v836_v19  }
  0x45   : > { %388 = vperm.xlu0 %945, %v835_v20   ;;  %383 = vperm.xlu1 %946, %v834_v21  }
  0x49   : > { %538 = vperm.xlu0 %945, %v846_v22   ;;  %543 = vperm.xlu1 %946, %v847_v23  }
  0x4d   : > { %548 = vperm.xlu0 %945, %v848_v24   ;;  %553 = vperm.xlu1 %946, %v849_v25  }
  0xb4   : > { %v243_v26 = vpop.permute.xlu0 %242  ;;  %v233_v29 = vpop.permute.xlu1 %232 }
  0xb8   : > { %v238_v34 = vpop.permute.xlu0 %237  ;;  %v228_v40 = vpop.permute.xlu1 %227 }
  0xbc   : > { %v399_v7 = vpop.permute.xlu0 %398  ;;  %v394_v9 = vpop.permute.xlu1 %393 }
  0xc0   : > { %v389_v14 = vpop.permute.xlu0 %388  ;;  %v384_v17 = vpop.permute.xlu1 %383 }
  0xf7   : > { %v324_v27 = vpop.f32.mrf.mxu0  ;;  %v336_v28 = vpop.f32.mrf.mxu1 }
  0xf8   : > { %v337_v39 = vadd.f32 %v336_v28, %v238_v34  ;;  %v325_v48 = vadd.f32 %v324_v27, %v228_v40 }
  0xf9   : > { %v326_v30 = vpop.f32.mrf.mxu0  ;;  %v338_v31 = vpop.f32.mrf.mxu1 }
  0xfa   : > { %v339_v36 = vadd.f32 %v338_v31, %v238_v34  ;;  %v327_v43 = vadd.f32 %v326_v30, %v228_v40  ;;  %v359_v49 = vmul.f32 0.01, %v337_v39  ;;  %vm351_vm4 = vcmp.gt.f32.partialorder %v337_v39, 0.0  ;;  %v843_v40 = vld [vmem:[%s1364_s1 + $0x48] sm:$0xff] }
  0xfb   : > { %v330_v32 = vpop.f32.mrf.mxu0  ;;  %v342_v33 = vpop.f32.mrf.mxu1  ;;  %v355_v56 = vmul.f32 0.01, %v325_v48  ;;  %vm347_vm8 = vcmp.gt.f32.partialorder %v325_v48, 0.0 }
  0xfc   : > { %v343_v35 = vadd.f32 %v342_v33, %v243_v26  ;;  %v331_v44 = vadd.f32 %v330_v32, %v233_v29  ;;  %v360_v46 = vmul.f32 0.01, %v339_v36  ;;  %vm352_vm3 = vcmp.gt.f32.partialorder %v339_v36, 0.0 }
  0xfd   : > { %v332_v37 = vpop.f32.mrf.mxu0  ;;  %v344_v38 = vpop.f32.mrf.mxu1  ;;  %v356_v54 = vmul.f32 0.01, %v327_v43  ;;  %v367_v57 = vsel %vm351_vm4, %v337_v39, %v359_v49  ;;  %vm348_vm7 = vcmp.gt.f32.partialorder %v327_v43, 0.0  ;;  %v363_v62 = vsel %vm347_vm8, %v325_v48, %v355_v56 }
  0xfe   : > { %v333_v41 = vadd.f32 %v332_v37, %v233_v29  ;;  %v345_v42 = vadd.f32 %v344_v38, %v243_v26  ;;  %v361_v45 = vmul.f32 0.01, %v343_v35  ;;  %vm353_vm1 = vcmp.gt.f32.partialorder %v343_v35, 0.0  ;;  %v842_v38 = vld [vmem:[%s1364_s1 + $0x40] sm:$0xff]  ;;  %v544_v49 = vpop.permute.xlu1 %543 }
  0xff   : > { %v357_v52 = vmul.f32 0.01, %v331_v44  ;;  %vm349_vm6 = vcmp.gt.f32.partialorder %v331_v44, 0.0  ;;  %v368_v55 = vsel %vm352_vm3, %v339_v36, %v360_v46  ;;  %v364_v60 = vsel %vm348_vm7, %v327_v43, %v356_v54  ;;  %v539_v43 = vpop.permute.xlu0 %538 }
 0x100   : > { %v362_v47 = vmul.f32 0.01, %v345_v42  ;;  %vm354_vm2 = vcmp.gt.f32.partialorder %v345_v42, 0.0  ;;  %v358_v50 = vmul.f32 0.01, %v333_v41  ;;  %v369_v53 = vsel %vm353_vm1, %v343_v35, %v361_v45 }
 0x101   : > { %vm350_vm5 = vcmp.gt.f32.partialorder %v333_v41, 0.0  ;;  %v365_v59 = vsel %vm349_vm6, %v331_v44, %v357_v52 }
 0x102   : > { %v370_v51 = vsel %vm354_vm2, %v345_v42, %v362_v47  ;;  %v366_v58 = vsel %vm350_vm5, %v333_v41, %v358_v50  ;;  %v844_v41 = vld [vmem:[%s1364_s1 + $0x50] sm:$0xff]  ;;  %v845_v42 = vld [vmem:[%s1364_s1 + $0x58] sm:$0xff] }
 0x103   : > { %437 = vmatprep.subr.mxu1 %v370_v51 }
 0x104   : > { %438 = vmatpush1.msra.mxu1 %v369_v53 }
 0x105   : > { %439 = vmatprep.subr.mxu1 %v368_v55  ;;  %v549_v55 = vpop.permute.xlu0 %548 }
 0x106   : > { %440 = vmatpush1.msra.mxu1 %v367_v57 }
 0x107   : > { %441 = vmatprep.subr.mxu1 %v366_v58 }
 0x108   : > { %442 = vmatpush1.msra.mxu1 %v365_v59 }
 0x109   : > { %443 = vmatprep.subr.mxu1 %v364_v60 }
 0x10a   : > { %444 = vmatpush1.msra.mxu1 %v363_v62  ;;  %v554_v62 = vpop.permute.xlu1 %553 }
 0x10b   : > { %838 = vmatmul.mubr.msk.f32.vlgmr.msra.gmra.mxu1 %vm245_vm0, %v830_v61 }
 0x10c   : > { %483 = vmatprep.mubr.f32.mxu1 %v1092_v0 }
 0x10f   : > { %839 = vmatmul.mubr.msk.f32.gmra.mxu1 %vm245_vm0, %v831_v63 }
 0x110   : > { %489 = vmatprep.mubr.f32.mxu1 %v1092_v0 }
 0x113   : > { %840 = vmatmul.mubr.msk.f32.gmra.mxu1 %vm245_vm0, %v832_v1 }
 0x114   : > { %495 = vmatprep.mubr.f32.mxu1 %v1092_v0 }
 0x117   : > { %841 = vmatmul.mubr.msk.f32.gmra.mxu1 %vm245_vm0, %v833_v2 }
 0x1cb   : > { %v479_v3 = vpop.f32.mrf.mxu1 }
 0x1cc   : > { %v480_v25 = vadd.f32 %v479_v3, %v384_v17 }
 0x1cd   : > { %v481_v4 = vpop.f32.mrf.mxu1 }
 0x1ce   : > { %v482_v20 = vadd.f32 %v481_v4, %v384_v17  ;;  %v510_v33 = vmul.f32 0.01, %v480_v25  ;;  %vm502_vm1 = vcmp.gt.f32.partialorder %v480_v25, 0.0 }
 0x1cf   : > { %v485_v5 = vpop.f32.mrf.mxu1 }
 0x1d0   : > { %v486_v21 = vadd.f32 %v485_v5, %v389_v14  ;;  %v511_v31 = vmul.f32 0.01, %v482_v20  ;;  %vm503_vm15 = vcmp.gt.f32.partialorder %v482_v20, 0.0  ;;  %v518_v39 = vsel %vm502_vm1, %v480_v25, %v510_v33 }
 0x1d1   : > { %v487_v6 = vpop.f32.mrf.mxu1 }
 0x1d2   : > { %v488_v18 = vadd.f32 %v487_v6, %v389_v14  ;;  %v512_v29 = vmul.f32 0.01, %v486_v21  ;;  %vm504_vm14 = vcmp.gt.f32.partialorder %v486_v21, 0.0  ;;  %v519_v37 = vsel %vm503_vm15, %v482_v20, %v511_v31 }
 0x1d3   : > { %v491_v8 = vpop.f32.mrf.mxu1 }
 0x1d4   : > { %v492_v15 = vadd.f32 %v491_v8, %v394_v9  ;;  %v513_v27 = vmul.f32 0.01, %v488_v18  ;;  %vm505_vm13 = vcmp.gt.f32.partialorder %v488_v18, 0.0  ;;  %v520_v36 = vsel %vm504_vm14, %v486_v21, %v512_v29 }
 0x1d5   : > { %v493_v10 = vpop.f32.mrf.mxu1 }
 0x1d6   : > { %v494_v12 = vadd.f32 %v493_v10, %v394_v9  ;;  %v514_v26 = vmul.f32 0.01, %v492_v15  ;;  %vm506_vm12 = vcmp.gt.f32.partialorder %v492_v15, 0.0  ;;  %v521_v35 = vsel %vm505_vm13, %v488_v18, %v513_v27 }
 0x1d7   : > { %v497_v11 = vpop.f32.mrf.mxu1 }
 0x1d8   : > { %v498_v13 = vadd.f32 %v497_v11, %v399_v7  ;;  %v515_v23 = vmul.f32 0.01, %v494_v12  ;;  %vm507_vm11 = vcmp.gt.f32.partialorder %v494_v12, 0.0  ;;  %v522_v34 = vsel %vm506_vm12, %v492_v15, %v514_v26 }
 0x1d9   : > { %v499_v16 = vpop.f32.mrf.mxu1 }
 0x1da   : > { %v500_v19 = vadd.f32 %v499_v16, %v399_v7  ;;  %v516_v22 = vmul.f32 0.01, %v498_v13  ;;  %vm508_vm9 = vcmp.gt.f32.partialorder %v498_v13, 0.0  ;;  %v523_v32 = vsel %vm507_vm11, %v494_v12, %v515_v23 }
 0x1dc   : > { %v517_v24 = vmul.f32 0.01, %v500_v19  ;;  %vm509_vm10 = vcmp.gt.f32.partialorder %v500_v19, 0.0  ;;  %v524_v30 = vsel %vm508_vm9, %v498_v13, %v516_v22 }
 0x1de   : > { %v525_v28 = vsel %vm509_vm10, %v500_v19, %v517_v24 }
 0x1df   : > { %592 = vmatprep.subr.mxu0 %v525_v28 }
 0x1e0   : > { %593 = vmatpush1.msra.mxu0 %v524_v30 }
 0x1e1   : > { %594 = vmatprep.subr.mxu0 %v523_v32 }
 0x1e2   : > { %595 = vmatpush1.msra.mxu0 %v522_v34 }
 0x1e3   : > { %596 = vmatprep.subr.mxu0 %v521_v35 }
 0x1e4   : > { %597 = vmatpush1.msra.mxu0 %v520_v36 }
 0x1e5   : > { %598 = vmatprep.subr.mxu0 %v519_v37 }
 0x1e6   : > { %599 = vmatpush1.msra.mxu0 %v518_v39 }
 0x1e7   : > { %850 = vmatmul.mubr.msk.f32.vlgmr.msra.gmra.mxu0 %vm245_vm0, %v842_v38 }
 0x1e8   : > { %638 = vmatprep.mubr.f32.mxu0 %v1092_v0 }
 0x1eb   : > { %851 = vmatmul.mubr.msk.f32.gmra.mxu0 %vm245_vm0, %v843_v40 }
 0x1ec   : > { %644 = vmatprep.mubr.f32.mxu0 %v1092_v0 }
 0x1ef   : > { %852 = vmatmul.mubr.msk.f32.gmra.mxu0 %vm245_vm0, %v844_v41 }
 0x1f0   : > { %650 = vmatprep.mubr.f32.mxu0 %v1092_v0 }
 0x1f3   : > { %853 = vmatmul.mubr.msk.f32.gmra.mxu0 %vm245_vm0, %v845_v42 }
 0x2a7   : > { %v634_v44 = vpop.f32.mrf.mxu0 }
 0x2a8   : > { %v635_v45 = vadd.f32 %v634_v44, %v539_v43 }
 0x2a9   : > { %v636_v46 = vpop.f32.mrf.mxu0 }
 0x2aa   : > { %v854_v47 = vmul.f32 -1.442695, %v635_v45  ;;  %v637_v48 = vadd.f32 %v636_v46, %v539_v43 }
 0x2ab   : > { %v640_v50 = vpop.f32.mrf.mxu0 }
 0x2ac   : > { %947 = vpow2.f32 %v854_v47  ;;  %v855_v51 = vmul.f32 -1.442695, %v637_v48  ;;  %v641_v52 = vadd.f32 %v640_v50, %v544_v49 }
 0x2ad   : > { %v642_v53 = vpop.f32.mrf.mxu0 }
 0x2ae   : > { %949 = vpow2.f32 %v855_v51  ;;  %v856_v0 = vmul.f32 -1.442695, %v641_v52  ;;  %v643_v54 = vadd.f32 %v642_v53, %v544_v49 }
 0x2af   : > { %v646_v56 = vpop.f32.mrf.mxu0 }
 0x2b0   : > { %951 = vpow2.f32 %v856_v0  ;;  %v857_v57 = vmul.f32 -1.442695, %v643_v54  ;;  %v647_v58 = vadd.f32 %v646_v56, %v549_v55 }
 0x2b1   : > { %v648_v59 = vpop.f32.mrf.mxu0 }
 0x2b2   : > { %953 = vpow2.f32 %v857_v57  ;;  %v858_v60 = vmul.f32 -1.442695, %v647_v58  ;;  %v649_v61 = vadd.f32 %v648_v59, %v549_v55 }
 0x2b3   : > { %v652_v63 = vpop.f32.mrf.mxu0 }
 0x2b4   : > { %955 = vpow2.f32 %v858_v60  ;;  %v859_v1 = vmul.f32 -1.442695, %v649_v61  ;;  %v653_v2 = vadd.f32 %v652_v63, %v554_v62 }
 0x2b5   : > { %v654_v3 = vpop.f32.mrf.mxu0 }
 0x2b6   : > { %957 = vpow2.f32 %v859_v1  ;;  %v860_v4 = vmul.f32 -1.442695, %v653_v2  ;;  %v655_v5 = vadd.f32 %v654_v3, %v554_v62 }
 0x2b8   : > { %959 = vpow2.f32 %v860_v4  ;;  %v861_v6 = vmul.f32 -1.442695, %v655_v5 }
 0x2b9   : > { %v948_v7 = vpop.eup %947 }
 0x2ba   : > { %v681_v8 = vadd.f32 1.0, %v948_v7  ;;  %961 = vpow2.f32 %v861_v6 }
 0x2bb   : > { %v950_v9 = vpop.eup %949 }
 0x2bc   : > { %963 = vrcp.f32 %v681_v8  ;;  %v682_v10 = vadd.f32 1.0, %v950_v9 }
 0x2bd   : > { %v952_v11 = vpop.eup %951 }
 0x2be   : > { %965 = vrcp.f32 %v682_v10  ;;  %v683_v12 = vadd.f32 1.0, %v952_v11 }
 0x2bf   : > { %v954_v13 = vpop.eup %953 }
 0x2c0   : > { %967 = vrcp.f32 %v683_v12  ;;  %v684_v14 = vadd.f32 1.0, %v954_v13 }
 0x2c1   : > { %v956_v15 = vpop.eup %955 }
 0x2c2   : > { %969 = vrcp.f32 %v684_v14  ;;  %v685_v16 = vadd.f32 1.0, %v956_v15 }
 0x2c3   : > { %v958_v17 = vpop.eup %957 }
 0x2c4   : > { %971 = vrcp.f32 %v685_v16  ;;  %v686_v18 = vadd.f32 1.0, %v958_v17 }
 0x2c5   : > { %v960_v19 = vpop.eup %959 }
 0x2c6   : > { %973 = vrcp.f32 %v686_v18  ;;  %v687_v20 = vadd.f32 1.0, %v960_v19 }
 0x2c7   : > { %v962_v21 = vpop.eup %961 }
 0x2c8   : > { %975 = vrcp.f32 %v687_v20  ;;  %v688_v22 = vadd.f32 1.0, %v962_v21 }
 0x2c9   : > { %v964_v23 = vpop.eup %963 }
 0x2ca   : > { %705 = vst [vmem:[%s206_s7] sm:$0xff] %v964_v23  ;;  %977 = vrcp.f32 %v688_v22 }
 0x2cb   : > { %v966_v24 = vpop.eup %965 }
 0x2cc   : > { %706 = vst [vmem:[%s206_s7 + $0x8] sm:$0xff] %v966_v24 }
 0x2cd   : > { %v968_v25 = vpop.eup %967 }
 0x2ce   : > { %707 = vst [vmem:[%s206_s7 + $0x10] sm:$0xff] %v968_v25 }
 0x2cf   : > { %v970_v26 = vpop.eup %969 }
 0x2d0   : > { %708 = vst [vmem:[%s206_s7 + $0x18] sm:$0xff] %v970_v26 }
 0x2d1   : > { %v972_v27 = vpop.eup %971 }
 0x2d2   : > { %709 = vst [vmem:[%s206_s7 + $0x20] sm:$0xff] %v972_v27 }
 0x2d3   : > { %v974_v28 = vpop.eup %973 }
 0x2d4   : > { %710 = vst [vmem:[%s206_s7 + $0x28] sm:$0xff] %v974_v28 }
 0x2d5   : > { %v976_v29 = vpop.eup %975 }
 0x2d6   : > { %711 = vst [vmem:[%s206_s7 + $0x30] sm:$0xff] %v976_v29 }
 0x2d7   : > { %v978_v30 = vpop.eup %977 }
 0x2d8   : > { %712 = vst [vmem:[%s206_s7 + $0x38] sm:$0xff] %v978_v30 }
 0x2d9   : > { %1020 = shalt.err (!%p1017_p6)
}
 0x2da   : > { %s1021_s23 = scalar_lea.hbm %s1313_s29, 1024  ;;  %s1025_s24 = scalar_lea.hbm %s1366_s3, 2048 }
 0x2db   : > { %p1022_p7 = scmp.ne.s32.totalorder %s1313_s29, %s1021_s23  ;;  %p1026_p13 = scmp.lt.s32.totalorder %s1313_s29, %s1366_s3 }
 0x2dc   : > { %p1027_p2 = scmp.lt.s32.totalorder %s1025_s24, %s1021_s23 }
 0x2dd   : > { %p1023_p10 = pnand %p1022_p7, %p1168_p9 }
 0x2de   : > { %p1028_p8 = por %p1027_p2, %p1026_p13 }
 0x2df   : > { %p1024_p4 = pneg %p1023_p10 }
 0x2e1   : > { %p1029_p12 = pnand %p1028_p8, %p1024_p4 }
 0x2e3   : > { %1032 = shalt.err (!%p1029_p12)
}
 0x2e4   : > { %s1095_s7 = smov 256   ;;  %s1096_s8 = smov 16  }
 0x2e5   : > { %879 = dma.vmem_to_hbm [thread:$0]  (%p1168_p9), %s1315_s9, 1024, %s1313_s29, %s714_s18, %s1095_s7, %s1095_s7, %s1096_s8  }
 0x2e6 PF: > { %s744_s10 = sand.u32 1, %s1067_s12   ;;  %p1372_p0 = scmp.ge.s32.totalorder %s1087_s17, 2 }
 0x2e7   : > { %s745_s11 = scalar_lea.sflag [#allocation4], %s744_s10 }
 0x2e8   : > { %p886_p1 = pnand %p1372_p0, %p1175_p11 }
 0x2ea   : > { %p887_p3 = pneg %p886_p1 }
 0x2ec   : > { %1062 = dma.done.wait (%p887_p3), %s745_s11, 1024  }
 0x2ed   : > { %1064 = vsyncadd (%p887_p3), %s745_s11, 4294966272  ;;  %s19_s17 = sadd.s32 1, %s1087_s17   ;;  %s1373_s12 = smov %s1071_s13 }
 0x2ee   : > { %p16_p5 = scmp.ge.s32.totalorder %s19_s17, 4   ;;  %s1374_s13 = smov %s1075_s14 }
 0x2ef   : > { %s1375_s14 = smov %s1173_s26  ;;  %s1376_s15 = smov %s1083_s16 }
 0x2f0   : > { %s1377_s16 = smov %s1379_s20  ;;  %18 = sbr.rel (!%p16_p5) target bundleno = 6 (0x6), region = 81 }
 0x2f5   :  { %750 = vsyncpa [#allocation3], 1 }
 0x2f6   :  { %752 = vsyncpa [#allocation3 + $0x1], 1 }
 0x2f7   :  { %753 = vsyncpa [#allocation4], 1 }
 0x2f8   :  { %755 = vsyncpa [#allocation4 + $0x1], 1 }

</bundles_post_ra>
